<compile_context>
chip_gen: v6e
topology: v6e:2x2x1
jax: 0.10.0
libtpu: 0.0.40
codegen_flags: <defaults>
</compile_context>

<pallas_src>
import functools
import math

import jax
import jax.numpy as jnp
from jax.experimental import pallas as pl
from jax.experimental.pallas import tpu as pltpu

_SUBLANE = 8  # TPU sublane width (second-to-last dim)


def _round_up(n, m):
    return ((n + m - 1) // m) * m


# ----------------------------------------------------------------------------
# Fused Pallas kernel: y = act_i(... act_0(x @ W0 + b0) ... @ W_{n-1} + b_{n-1})
# All intermediates stay in vregs/VMEM; never round-trip through HBM.
# ----------------------------------------------------------------------------
def _fused_mlp_kernel(*refs, n_layers, has_bias, activations, compute_dtype):
    # refs layout: x_ref, then per layer: w_ref [, b_ref], finally o_ref.
    x_ref, o_ref = refs[0], refs[-1]
    layer_refs = refs[1:-1]

    y = x_ref[...]
    idx = 0
    for i in range(n_layers):
        w = layer_refs[idx][...]
        idx += 1
        lhs = y if compute_dtype is None else y.astype(compute_dtype)
        rhs = w if compute_dtype is None else w.astype(compute_dtype)
        # bf16 operands, f32 MXU accumulation.
        y = jnp.dot(lhs, rhs, preferred_element_type=jnp.float32)
        if has_bias[i]:
            y = y + layer_refs[idx][...].astype(jnp.float32)  # (1, Fout) broadcast
            idx += 1
        act = activations[i]
        if act is not None:
            y = act(y)
    o_ref[...] = y.astype(o_ref.dtype)


# ----------------------------------------------------------------------------
# One-time parameter preparation (do NOT redo this per forward call).
# ----------------------------------------------------------------------------
def prepare_params(params, compute_dtype=jnp.bfloat16):
    """params: list of (W (out,in) f32, b (out,) or None) in PyTorch layout.
    Returns kernel-layout params: (W_t (in,out) in compute_dtype, b (1,out) f32)."""
    prepared = []
    for w, b in params:
        w_t = w.T
        if compute_dtype is not None:
            w_t = w_t.astype(compute_dtype)
        prepared.append((w_t, None if b is None else b.reshape(1, -1)))
    return prepared


def _default_batch_tile():
    try:
        vmem_bytes = pltpu.get_tpu_info().vmem_capacity_bytes
    except Exception:
        vmem_bytes = 128 * 1024 * 1024
    # v5e/v6e: 128 MiB VMEM -> ~85% of HBM roofline at 512-1024 row tiles.
    # v7x: 64 MiB VMEM (and 3.2 TB/s HBM) -> halve the tile.
    return 512 if vmem_bytes >= 96 * 1024 * 1024 else 256


# ----------------------------------------------------------------------------
# Forward: one fused pallas_call over a 1-D batch grid. No wrapper-side padding,
# no post-kernel slice.
# ----------------------------------------------------------------------------
def mlp_forward(prepared_params, x, activation=None, last_activation=None,
                compute_dtype=jnp.bfloat16, tm=None):
    n = len(prepared_params)
    B, f_in = x.shape
    assert f_in == prepared_params[0][0].shape[0]
    dims = [f_in] + [w.shape[1] for w, _ in prepared_params]

    if tm is None:
        tm = _default_batch_tile()
    tm = min(_round_up(B, _SUBLANE), _round_up(tm, _SUBLANE))
    grid = (pl.cdiv(B, tm),)

    has_bias = tuple(b is not None for _, b in prepared_params)
    acts = tuple(last_activation if i == n - 1 else activation for i in range(n))

    kernel = functools.partial(
        _fused_mlp_kernel, n_layers=n, has_bias=has_bias, activations=acts,
        compute_dtype=compute_dtype)

    # Advisory cost estimate (truthful transcendental count) + VMEM budget.
    flops = sum(2 * B * dims[i] * dims[i + 1] for i in range(n))
    transcendentals = sum(B * dims[i + 1] for i in range(n) if acts[i] is not None)
    param_bytes = sum(
        w.size * w.dtype.itemsize + (0 if b is None else b.size * b.dtype.itemsize)
        for w, b in prepared_params)
    bytes_accessed = (x.size * x.dtype.itemsize + param_bytes
                      + B * dims[-1] * x.dtype.itemsize)

    f32b = 4
    vmem_needed = (2 * param_bytes                        # worst case: double-buffered params
                   + 2 * tm * (dims[0] + dims[-1]) * f32b  # pipelined x / out tiles
                   + 4 * tm * max(dims) * f32b)            # headroom: f32 intermediates
    vmem_limit = int(min(max(vmem_needed, 32 * 1024 * 1024), 64 * 1024 * 1024))

    out_shape = jax.ShapeDtypeStruct((B, dims[-1]), x.dtype)
    compiler_params = pltpu.CompilerParams(
        dimension_semantics=("parallel",),  # batch axis -> both TensorCores on v7x
        vmem_limit_bytes=vmem_limit)
    cost = pl.CostEstimate(flops=flops, transcendentals=transcendentals,
                           bytes_accessed=bytes_accessed)

    def run(weight_pipeline_mode):
        inputs = [x]
        in_specs = [pl.BlockSpec((tm, dims[0]), lambda i: (i, 0))]
        for w, b in prepared_params:
            inputs.append(w)
            in_specs.append(pl.BlockSpec(w.shape, lambda i: (0, 0),
                                         pipeline_mode=weight_pipeline_mode))
            if b is not None:
                inputs.append(b)
                in_specs.append(pl.BlockSpec(b.shape, lambda i: (0, 0),
                                             pipeline_mode=weight_pipeline_mode))
        return pl.pallas_call(
            kernel,
            out_shape=out_shape,
            grid=grid,
            in_specs=in_specs,
            out_specs=pl.BlockSpec((tm, dims[-1]), lambda i: (i, 0)),
            compiler_params=compiler_params,
            cost_estimate=cost,
        )(*inputs)

    try:
        # Weights/biases have a constant block index across the batch grid, so a
        # single resident buffer suffices (no double-buffer -> half the VMEM).
        return run(pl.Buffered(1))
    except Exception:
        # Fallback if this jax build does not accept Buffered(1) in pallas_call
        # BlockSpecs: default buffering (blocks are still not re-fetched).
        return run(None)


# ----------------------------------------------------------------------------
# Deterministic parameter init (matches torch: xavier_uniform_ W, zeros bias),
# in PyTorch layout (W is (out, in)).
# ----------------------------------------------------------------------------
def xavier_uniform(key, fan_out, fan_in, gain=1.0, dtype=jnp.float32):
    bound = gain * math.sqrt(6.0 / (fan_in + fan_out))
    return jax.random.uniform(key, (fan_out, fan_in), dtype, -bound, bound)


def init_mlp_params(key, hidden_dims, bias=True):
    params = []
    n_layers = len(hidden_dims)
    keys = jax.random.split(key, n_layers - 1)
    for i in range(n_layers - 1):
        fin, fout = hidden_dims[i], hidden_dims[i + 1]
        w = xavier_uniform(keys[i], fout, fin)                     # (out, in)
        b = jnp.zeros((fout,), jnp.float32) if bias else None
        params.append((w, b))
    return params


# Pure-JAX reference mirroring the PyTorch MLP forward (x @ W.T + b per layer),
# using the same matmul-operand precision as the kernel when compute_dtype set.
def mlp_reference(params, x, activation=None, last_activation=None,
                  compute_dtype=jnp.bfloat16):
    n = len(params)
    y = x
    for i, (w, b) in enumerate(params):
        lhs, rhs = y, w.T
        if compute_dtype is not None:
            lhs, rhs = lhs.astype(compute_dtype), rhs.astype(compute_dtype)
        y = jnp.dot(lhs, rhs, preferred_element_type=jnp.float32)
        if b is not None:
            y = y + b
        act = last_activation if i == n - 1 else activation
        if act is not None:
            y = act(y)
    return y


if __name__ == "__main__":
    key = jax.random.PRNGKey(0)
    k_param, k_x, k_b = jax.random.split(key, 3)

    # MLP(hidden_dims=[16, 32, 32, 8]) -> 3 Dense layers.
    hidden_dims = [16, 32, 32, 8]
    batch = 8

    x = jax.random.normal(k_x, (batch, hidden_dims[0]), dtype=jnp.float32)

    # 1) Default MLP: bias=True (zeros init), no activations.
    params = init_mlp_params(k_param, hidden_dims, bias=True)
    prepared = prepare_params(params)          # one-time: transpose + bf16 cast
    out = jax.block_until_ready(mlp_forward(prepared, x))
    assert out.shape == (batch, hidden_dims[-1])
    ref = mlp_reference(params, x)
    assert jnp.allclose(out, ref, atol=1e-4, rtol=1e-4), "mismatch vs matched-precision ref"
    ref_f32 = mlp_reference(params, x, compute_dtype=None)
    assert jnp.allclose(out, ref_f32, atol=5e-2, rtol=5e-2), "mismatch vs f32 reference"

    # 2) No bias, silu hidden activation.
    params_nb = init_mlp_params(k_param, hidden_dims, bias=False)
    prepared_nb = prepare_params(params_nb)
    out_nb = jax.block_until_ready(mlp_forward(prepared_nb, x, activation=jax.nn.silu))
    ref_nb = mlp_reference(params_nb, x, activation=jax.nn.silu)
    assert jnp.allclose(out_nb, ref_nb, atol=1e-4, rtol=1e-4), "mismatch (no-bias/silu)"

    # 3) Non-zero biases + silu hidden / tanh last activation (exercises bias add).
    params_b = [(w, 0.1 * jax.random.normal(jax.random.fold_in(k_b, i), b.shape))
                for i, (w, b) in enumerate(params)]
    prepared_b = prepare_params(params_b)
    out_b = jax.block_until_ready(
        mlp_forward(prepared_b, x, activation=jax.nn.silu, last_activation=jnp.tanh))
    ref_b = mlp_reference(params_b, x, activation=jax.nn.silu, last_activation=jnp.tanh)
    assert jnp.allclose(out_b, ref_b, atol=1e-4, rtol=1e-4), "mismatch (bias/tanh)"

    print("KERNEL_OK")
</pallas_src>

<mosaic_0001>
module attributes {stable_mosaic.version = 11 : i64} {
  func.func @_fused_mlp_kernel(%arg0: i32, %arg1: memref<8x16xf32, #tpu.memory_space<vmem>>, %arg2: memref<16x32xbf16, #tpu.memory_space<vmem>>, %arg3: memref<1x32xf32, #tpu.memory_space<vmem>>, %arg4: memref<32x32xbf16, #tpu.memory_space<vmem>>, %arg5: memref<1x32xf32, #tpu.memory_space<vmem>>, %arg6: memref<32x8xbf16, #tpu.memory_space<vmem>>, %arg7: memref<1x8xf32, #tpu.memory_space<vmem>>, %arg8: memref<8x8xf32, #tpu.memory_space<vmem>>) attributes {dimension_semantics = [#tpu.dimension_semantics<parallel>], iteration_bounds = array<i64: 1>, scalar_prefetch = 0 : i64, scratch_operands = 0 : i64, tpu.core_type = #tpu.core_type<tc>, window_params = [{transform_indices = @transform_0, window_bounds = array<i64: 8, 16>}, {pipeline_mode = #tpu.pipeline_mode<synchronous>, transform_indices = @transform_1, window_bounds = array<i64: 16, 32>}, {pipeline_mode = #tpu.pipeline_mode<synchronous>, transform_indices = @transform_2, window_bounds = array<i64: 1, 32>}, {pipeline_mode = #tpu.pipeline_mode<synchronous>, transform_indices = @transform_3, window_bounds = array<i64: 32, 32>}, {pipeline_mode = #tpu.pipeline_mode<synchronous>, transform_indices = @transform_4, window_bounds = array<i64: 1, 32>}, {pipeline_mode = #tpu.pipeline_mode<synchronous>, transform_indices = @transform_5, window_bounds = array<i64: 32, 8>}, {pipeline_mode = #tpu.pipeline_mode<synchronous>, transform_indices = @transform_6, window_bounds = array<i64: 1, 8>}, {transform_indices = @transform_7, window_bounds = array<i64: 8, 8>}]} {
    %c0 = arith.constant 0 : index
    %c0_0 = arith.constant 0 : index
    %0 = vector.load %arg1[%c0, %c0_0] : memref<8x16xf32, #tpu.memory_space<vmem>>, vector<8x16xf32>
    %c0_1 = arith.constant 0 : index
    %c0_2 = arith.constant 0 : index
    %1 = vector.load %arg2[%c0_1, %c0_2] : memref<16x32xbf16, #tpu.memory_space<vmem>>, vector<16x32xbf16>
    %2 = arith.truncf %0 : vector<8x16xf32> to vector<8x16xbf16>
    %cst = arith.constant dense<0.000000e+00> : vector<8x32xf32>
    %3 = tpu.matmul %2, %1, %cst {dimension_numbers = #tpu.dot_dimension_numbers<[1], [0], [0], [1], [0, 0, 1, 1], [], []>} : vector<8x16xbf16>, vector<16x32xbf16>, vector<8x32xf32> -> vector<8x32xf32>
    %c0_3 = arith.constant 0 : index
    %c0_4 = arith.constant 0 : index
    %4 = vector.load %arg3[%c0_3, %c0_4] : memref<1x32xf32, #tpu.memory_space<vmem>>, vector<1x32xf32>
    %5 = vector.broadcast %4 : vector<1x32xf32> to vector<8x32xf32>
    %6 = arith.addf %3, %5 : vector<8x32xf32>
    %c0_5 = arith.constant 0 : index
    %c0_6 = arith.constant 0 : index
    %7 = vector.load %arg4[%c0_5, %c0_6] : memref<32x32xbf16, #tpu.memory_space<vmem>>, vector<32x32xbf16>
    %8 = arith.truncf %6 : vector<8x32xf32> to vector<8x32xbf16>
    %cst_7 = arith.constant dense<0.000000e+00> : vector<8x32xf32>
    %9 = tpu.matmul %8, %7, %cst_7 {dimension_numbers = #tpu.dot_dimension_numbers<[1], [0], [0], [1], [0, 0, 1, 1], [], []>} : vector<8x32xbf16>, vector<32x32xbf16>, vector<8x32xf32> -> vector<8x32xf32>
    %c0_8 = arith.constant 0 : index
    %c0_9 = arith.constant 0 : index
    %10 = vector.load %arg5[%c0_8, %c0_9] : memref<1x32xf32, #tpu.memory_space<vmem>>, vector<1x32xf32>
    %11 = vector.broadcast %10 : vector<1x32xf32> to vector<8x32xf32>
    %12 = arith.addf %9, %11 : vector<8x32xf32>
    %c0_10 = arith.constant 0 : index
    %c0_11 = arith.constant 0 : index
    %13 = vector.load %arg6[%c0_10, %c0_11] : memref<32x8xbf16, #tpu.memory_space<vmem>>, vector<32x8xbf16>
    %14 = arith.truncf %12 : vector<8x32xf32> to vector<8x32xbf16>
    %cst_12 = arith.constant dense<0.000000e+00> : vector<8x8xf32>
    %15 = tpu.matmul %14, %13, %cst_12 {dimension_numbers = #tpu.dot_dimension_numbers<[1], [0], [0], [1], [0, 0, 1, 1], [], []>} : vector<8x32xbf16>, vector<32x8xbf16>, vector<8x8xf32> -> vector<8x8xf32>
    %c0_13 = arith.constant 0 : index
    %c0_14 = arith.constant 0 : index
    %16 = vector.load %arg7[%c0_13, %c0_14] : memref<1x8xf32, #tpu.memory_space<vmem>>, vector<1x8xf32>
    %17 = vector.broadcast %16 : vector<1x8xf32> to vector<8x8xf32>
    %18 = arith.addf %15, %17 : vector<8x8xf32>
    %c0_15 = arith.constant 0 : index
    %c0_16 = arith.constant 0 : index
    %19 = vector.load %arg8[%c0_15, %c0_16] : memref<8x8xf32, #tpu.memory_space<vmem>>, vector<8x8xf32>
    tpu.vector_store %arg8[%c0_15, %c0_16], %18 {strides = array<i32>} : memref<8x8xf32, #tpu.memory_space<vmem>>, vector<8x8xf32>,
    return
  }
  func.func @transform_0(%arg0: i32) -> (i32, i32) {
    %c0_i32 = arith.constant 0 : i32
    %c0_i32_0 = arith.constant 0 : i32
    return %arg0, %c0_i32 : i32, i32
  }
  func.func @transform_1(%arg0: i32) -> (i32, i32) {
    %c0_i32 = arith.constant 0 : i32
    %c0_i32_0 = arith.constant 0 : i32
    %c0_i32_1 = arith.constant 0 : i32
    return %c0_i32, %c0_i32_0 : i32, i32
  }
  func.func @transform_2(%arg0: i32) -> (i32, i32) {
    %c0_i32 = arith.constant 0 : i32
    %c0_i32_0 = arith.constant 0 : i32
    %c0_i32_1 = arith.constant 0 : i32
    return %c0_i32, %c0_i32_0 : i32, i32
  }
  func.func @transform_3(%arg0: i32) -> (i32, i32) {
    %c0_i32 = arith.constant 0 : i32
    %c0_i32_0 = arith.constant 0 : i32
    %c0_i32_1 = arith.constant 0 : i32
    return %c0_i32, %c0_i32_0 : i32, i32
  }
  func.func @transform_4(%arg0: i32) -> (i32, i32) {
    %c0_i32 = arith.constant 0 : i32
    %c0_i32_0 = arith.constant 0 : i32
    %c0_i32_1 = arith.constant 0 : i32
    return %c0_i32, %c0_i32_0 : i32, i32
  }
  func.func @transform_5(%arg0: i32) -> (i32, i32) {
    %c0_i32 = arith.constant 0 : i32
    %c0_i32_0 = arith.constant 0 : i32
    %c0_i32_1 = arith.constant 0 : i32
    return %c0_i32, %c0_i32_0 : i32, i32
  }
  func.func @transform_6(%arg0: i32) -> (i32, i32) {
    %c0_i32 = arith.constant 0 : i32
    %c0_i32_0 = arith.constant 0 : i32
    %c0_i32_1 = arith.constant 0 : i32
    return %c0_i32, %c0_i32_0 : i32, i32
  }
  func.func @transform_7(%arg0: i32) -> (i32, i32) {
    %c0_i32 = arith.constant 0 : i32
    %c0_i32_0 = arith.constant 0 : i32
    return %arg0, %c0_i32 : i32, i32
  }
}

module attributes {stable_mosaic.version = 11 : i64} {
  func.func @_fused_mlp_kernel(%arg0: i32, %arg1: memref<8x16xf32, #tpu.memory_space<vmem>>, %arg2: memref<16x32xbf16, #tpu.memory_space<vmem>>, %arg3: memref<1x32xf32, #tpu.memory_space<vmem>>, %arg4: memref<32x32xbf16, #tpu.memory_space<vmem>>, %arg5: memref<1x32xf32, #tpu.memory_space<vmem>>, %arg6: memref<32x8xbf16, #tpu.memory_space<vmem>>, %arg7: memref<1x8xf32, #tpu.memory_space<vmem>>, %arg8: memref<8x8xf32, #tpu.memory_space<vmem>>) attributes {dimension_semantics = [#tpu.dimension_semantics<parallel>], iteration_bounds = array<i64: 1>, scalar_prefetch = 0 : i64, scratch_operands = 0 : i64, tpu.core_type = #tpu.core_type<tc>, window_params = [{transform_indices = @transform_0, window_bounds = array<i64: 8, 16>}, {pipeline_mode = #tpu.pipeline_mode<synchronous>, transform_indices = @transform_1, window_bounds = array<i64: 16, 32>}, {pipeline_mode = #tpu.pipeline_mode<synchronous>, transform_indices = @transform_2, window_bounds = array<i64: 1, 32>}, {pipeline_mode = #tpu.pipeline_mode<synchronous>, transform_indices = @transform_3, window_bounds = array<i64: 32, 32>}, {pipeline_mode = #tpu.pipeline_mode<synchronous>, transform_indices = @transform_4, window_bounds = array<i64: 1, 32>}, {pipeline_mode = #tpu.pipeline_mode<synchronous>, transform_indices = @transform_5, window_bounds = array<i64: 32, 8>}, {pipeline_mode = #tpu.pipeline_mode<synchronous>, transform_indices = @transform_6, window_bounds = array<i64: 1, 8>}, {transform_indices = @transform_7, window_bounds = array<i64: 8, 8>}]} {
    %c0 = arith.constant 0 : index
    %c0_0 = arith.constant 0 : index
    %0 = vector.load %arg1[%c0, %c0_0] : memref<8x16xf32, #tpu.memory_space<vmem>>, vector<8x16xf32>
    %c0_1 = arith.constant 0 : index
    %c0_2 = arith.constant 0 : index
    %1 = vector.load %arg2[%c0_1, %c0_2] : memref<16x32xbf16, #tpu.memory_space<vmem>>, vector<16x32xbf16>
    %2 = arith.truncf %0 : vector<8x16xf32> to vector<8x16xbf16>
    %cst = arith.constant dense<0.000000e+00> : vector<8x32xf32>
    %3 = tpu.matmul %2, %1, %cst {dimension_numbers = #tpu.dot_dimension_numbers<[1], [0], [0], [1], [0, 0, 1, 1], [], []>} : vector<8x16xbf16>, vector<16x32xbf16>, vector<8x32xf32> -> vector<8x32xf32>
    %c0_3 = arith.constant 0 : index
    %c0_4 = arith.constant 0 : index
    %4 = vector.load %arg3[%c0_3, %c0_4] : memref<1x32xf32, #tpu.memory_space<vmem>>, vector<1x32xf32>
    %5 = vector.broadcast %4 : vector<1x32xf32> to vector<8x32xf32>
    %6 = arith.addf %3, %5 : vector<8x32xf32>
    %c0_5 = arith.constant 0 : index
    %c0_6 = arith.constant 0 : index
    %7 = vector.load %arg4[%c0_5, %c0_6] : memref<32x32xbf16, #tpu.memory_space<vmem>>, vector<32x32xbf16>
    %8 = arith.truncf %6 : vector<8x32xf32> to vector<8x32xbf16>
    %cst_7 = arith.constant dense<0.000000e+00> : vector<8x32xf32>
    %9 = tpu.matmul %8, %7, %cst_7 {dimension_numbers = #tpu.dot_dimension_numbers<[1], [0], [0], [1], [0, 0, 1, 1], [], []>} : vector<8x32xbf16>, vector<32x32xbf16>, vector<8x32xf32> -> vector<8x32xf32>
    %c0_8 = arith.constant 0 : index
    %c0_9 = arith.constant 0 : index
    %10 = vector.load %arg5[%c0_8, %c0_9] : memref<1x32xf32, #tpu.memory_space<vmem>>, vector<1x32xf32>
    %11 = vector.broadcast %10 : vector<1x32xf32> to vector<8x32xf32>
    %12 = arith.addf %9, %11 : vector<8x32xf32>
    %c0_10 = arith.constant 0 : index
    %c0_11 = arith.constant 0 : index
    %13 = vector.load %arg6[%c0_10, %c0_11] : memref<32x8xbf16, #tpu.memory_space<vmem>>, vector<32x8xbf16>
    %14 = arith.truncf %12 : vector<8x32xf32> to vector<8x32xbf16>
    %cst_12 = arith.constant dense<0.000000e+00> : vector<8x8xf32>
    %15 = tpu.matmul %14, %13, %cst_12 {dimension_numbers = #tpu.dot_dimension_numbers<[1], [0], [0], [1], [0, 0, 1, 1], [], []>} : vector<8x32xbf16>, vector<32x8xbf16>, vector<8x8xf32> -> vector<8x8xf32>
    %c0_13 = arith.constant 0 : index
    %c0_14 = arith.constant 0 : index
    %16 = vector.load %arg7[%c0_13, %c0_14] : memref<1x8xf32, #tpu.memory_space<vmem>>, vector<1x8xf32>
    %17 = vector.broadcast %16 : vector<1x8xf32> to vector<8x8xf32>
    %18 = arith.addf %15, %17 : vector<8x8xf32>
    %c0_15 = arith.constant 0 : index
    %c0_16 = arith.constant 0 : index
    %19 = vector.load %arg8[%c0_15, %c0_16] : memref<8x8xf32, #tpu.memory_space<vmem>>, vector<8x8xf32>
    tpu.vector_store %arg8[%c0_15, %c0_16], %18 {strides = array<i32>} : memref<8x8xf32, #tpu.memory_space<vmem>>, vector<8x8xf32>,
    return
  }
  func.func @transform_0(%arg0: i32) -> (i32, i32) {
    %c0_i32 = arith.constant 0 : i32
    %c0_i32_0 = arith.constant 0 : i32
    return %arg0, %c0_i32 : i32, i32
  }
  func.func @transform_1(%arg0: i32) -> (i32, i32) {
    %c0_i32 = arith.constant 0 : i32
    %c0_i32_0 = arith.constant 0 : i32
    %c0_i32_1 = arith.constant 0 : i32
    return %c0_i32, %c0_i32_0 : i32, i32
  }
  func.func @transform_2(%arg0: i32) -> (i32, i32) {
    %c0_i32 = arith.constant 0 : i32
    %c0_i32_0 = arith.constant 0 : i32
    %c0_i32_1 = arith.constant 0 : i32
    return %c0_i32, %c0_i32_0 : i32, i32
  }
  func.func @transform_3(%arg0: i32) -> (i32, i32) {
    %c0_i32 = arith.constant 0 : i32
    %c0_i32_0 = arith.constant 0 : i32
    %c0_i32_1 = arith.constant 0 : i32
    return %c0_i32, %c0_i32_0 : i32, i32
  }
  func.func @transform_4(%arg0: i32) -> (i32, i32) {
    %c0_i32 = arith.constant 0 : i32
    %c0_i32_0 = arith.constant 0 : i32
    %c0_i32_1 = arith.constant 0 : i32
    return %c0_i32, %c0_i32_0 : i32, i32
  }
  func.func @transform_5(%arg0: i32) -> (i32, i32) {
    %c0_i32 = arith.constant 0 : i32
    %c0_i32_0 = arith.constant 0 : i32
    %c0_i32_1 = arith.constant 0 : i32
    return %c0_i32, %c0_i32_0 : i32, i32
  }
  func.func @transform_6(%arg0: i32) -> (i32, i32) {
    %c0_i32 = arith.constant 0 : i32
    %c0_i32_0 = arith.constant 0 : i32
    %c0_i32_1 = arith.constant 0 : i32
    return %c0_i32, %c0_i32_0 : i32, i32
  }
  func.func @transform_7(%arg0: i32) -> (i32, i32) {
    %c0_i32 = arith.constant 0 : i32
    %c0_i32_0 = arith.constant 0 : i32
    return %arg0, %c0_i32 : i32, i32
  }
}

</mosaic_0001>

<bundles_post_ra>
// kernel: tpu_custom_call.1
= control target key start
LH: loop header
LB: loop body
LE: loop exit
PB: predicated region body
PF: predicated region fallthrough
CT: control target
= control target key end

     0   :  { %12 = vsyncpa [#allocation3], 0  ;;  %s464_s0 = inlined_call_operand.vmem [shape: f32[8,16], index: 0, kind: input, shape index: {}]   ;;  %s465_s1 = inlined_call_operand.hbm [shape: bf16[16,32], index: 1, kind: input, shape index: {}]   ;;  %s466_s2 = inlined_call_operand.vmem [shape: f32[1,32], index: 2, kind: input, shape index: {}]   ;;  %s467_s3 = inlined_call_operand.vmem [shape: bf16[32,32], index: 3, kind: input, shape index: {}]   ;;  %s468_s4 = inlined_call_operand.hbm [shape: f32[1,32], index: 4, kind: input, shape index: {}]   ;;  %s469_s5 = inlined_call_operand.vmem [shape: bf16[32,8], index: 5, kind: input, shape index: {}]   ;;  %s470_s6 = inlined_call_operand.vmem [shape: f32[1,8], index: 6, kind: input, shape index: {}]   ;;  %s471_s7 = inlined_call_operand.hbm [shape: f32[8,8], index: 7, kind: output, shape index: {}]  }
   0x1   :  { %13 = vsyncpa [#allocation6], 0 }
   0x2   :  { %14 = vsyncpa [#allocation4], 0  ;;  %s387_s24 = smov [#allocation2]  }
   0x3   :  { %s22_s25 = sshll.u32 %s387_s24, 4  ;;  %s23_s25 = int_to_ptr.vmem [resolvable:$true] %s22_s25 }
   0x4   :  { %s329_s26 = scalar_lea.vmem %s23_s25, 128  ;;  %p334_p1 = scmp.lt.s32.totalorder %s23_s25, %s23_s25 }
   0x5   :  { %p330_p0 = scmp.ne.s32.totalorder %s23_s25, %s329_s26  ;;  %p335_p2 = scmp.lt.s32.totalorder %s329_s26, %s329_s26 }
   0x7   :  { %p336_p3 = por %p335_p2, %p334_p1 }
   0x9   :  { %p337_p4 = pnand %p336_p3, %p330_p0 }
   0xb   :  { %340 = shalt.err (!%p337_p4)
}
   0xc   :  { %s388_s27 = smov 64   ;;  %s389_s28 = smov 4  }
   0xd   :  { %28 = dma.hbm_to_vmem [thread:$0]  %s465_s1, 128, %s23_s25, [#allocation3], %s388_s27, %s388_s27, %s389_s28  }
   0xe   :  { %s390_s8 = smov [#allocation5]  }
   0xf   :  { %s39_s9 = sshll.u32 %s390_s8, 4  ;;  %s40_s9 = int_to_ptr.vmem [resolvable:$true] %s39_s9 }
  0x10   :  { %s349_s10 = scalar_lea.vmem %s40_s9, 16  ;;  %s353_s11 = scalar_lea.vmem %s40_s9, 32 }
  0x11   :  { %p350_p5 = scmp.ne.s32.totalorder %s40_s9, %s349_s10  ;;  %p354_p6 = scmp.lt.s32.totalorder %s40_s9, %s40_s9 }
  0x12   :  { %p355_p7 = scmp.lt.s32.totalorder %s353_s11, %s349_s10 }
  0x14   :  { %p356_p8 = por %p355_p7, %p354_p6 }
  0x16   :  { %p357_p9 = pnand %p356_p8, %p350_p5 }
  0x18   :  { %360 = shalt.err (!%p357_p9)
}
  0x19   :  { %42 = dma.hbm_to_vmem [thread:$0]  %s468_s4, 16, %s40_s9, [#allocation6]  }
  0x1a   :  { %381 = dma.done.wait [#allocation3], 128  }
  0x1b   :  { %382 = vsyncadd [#allocation3], 4294967168 }
  0x1c   :  { %383 = dma.done.wait [#allocation6], 16  }
  0x1d   :  { %384 = vsyncadd [#allocation6], 4294967280  ;;  %v391_v0 = vmov 0.0   ;;  %vm392_vm0 = vmmov 0   ;;  %v316_v1 = vld [vmem:[#allocation2] sm:$0xff]   ;;  %vm71_vm1 = vcmask 130048  }
  0x1e   :  { %287 = vmatprep.subr.bf16.mxu0 %v391_v0  ;;  %289 = vmatprep.mubr.msk.bf16.mxu0 %vm392_vm0, %v391_v0  ;;  %v54_v2 = vld [vmem:[%s464_s0] sm:$0xff]  ;;  %v317_v4 = vld [vmem:[%s467_s3 + $0x8] sm:$0xff]   ;;  %vm139_vm2 = vcmask 261120   ;;  %s393_s23 = smov [#allocation7]   ;;  %vm250_vm3 = vcmask 64512  }
  0x1f   :  { %293 = vmatprep.subr.bf16.mxu1 %v391_v0  ;;  %297 = vmatprep.mubr.msk.bf16.mxu1 %vm392_vm0, %v391_v0  ;;  %v57_v3 = vpack.c.bf16 %v54_v2, %v54_v2  ;;  %v318_v5 = vld [vmem:[%s467_s3] sm:$0xff]   ;;  %v319_v6 = vld [vmem:[%s469_s5 + $0x8] sm:$0xff]   ;;  %s258_s24 = sshll.u32 %s393_s23, 4  ;;  %s259_s24 = int_to_ptr.vmem [resolvable:$true] %s258_s24 }
  0x20   :  { %288 = vmatpush3.bf16.msra.mxu0 %v316_v1  ;;  %294 = vmatpush3.bf16.msra.mxu1 %v317_v4  ;;  %v268_v7 = vld [vmem:[%s466_s2] ss:$0 sm:$0xff]  ;;  %v271_v15 = vld [vmem:[#allocation5] ss:$0 sm:$0xff]  ;;  %p366_p11 = scmp.lt.s32.totalorder %s259_s24, %s259_s24 }
  0x21   :  { %301 = vmatprep.subr.bf16.mxu0 %v391_v0  ;;  %295 = vmatprep.subr.bf16.mxu1 %v391_v0  ;;  %v320_v14 = vld [vmem:[%s469_s5] sm:$0xff]   ;;  %s361_s5 = scalar_lea.vmem %s259_s24, 128 }
  0x22   :  { %v275_v22 = vld [vmem:[%s470_s6] ss:$0 sm:$0xff]  ;;  %p362_p10 = scmp.ne.s32.totalorder %s259_s24, %s361_s5  ;;  %p367_p12 = scmp.lt.s32.totalorder %s361_s5, %s361_s5 }
  0x23   :  { %290 = vmatmul.mubr.msk.bf16.vlgmr.msra.gmra.mxu0 %vm71_vm1, %v57_v3 }
  0x24   :  { %305 = vmatprep.mubr.msk.bf16.mxu0 %vm392_vm0, %v391_v0  ;;  %296 = vmatpush3.bf16.msra.mxu1 %v318_v5  ;;  %p368_p13 = por %p367_p12, %p366_p11 }
  0x25   :  { %302 = vmatpush3.bf16.msra.mxu0 %v319_v6 }
  0x26   :  { %303 = vmatprep.subr.bf16.mxu0 %v391_v0  ;;  %p369_p0 = pnand %p368_p13, %p362_p10 }
  0x29   :  { %304 = vmatpush3.bf16.msra.mxu0 %v320_v14 }
  0xe3   :  { %v109_v8 = vpop.f32.mrf.mxu0 }
  0xe4   :  { %v110_v9 = vadd.f32 %v268_v7, %v109_v8 }
  0xe5   :  { %v291_v10 = vpop.f32.mrf.mxu0 }
  0xe6   :  { %v119_v11 = vpack.c.bf16 %v110_v9, %v110_v9 }
  0xe7   :  { %v112_v12 = vpop.f32.mrf.mxu0 }
  0xe8   :  { %298 = vmatmul.mubr.msk.bf16.vlgmr.msra.gmra.mxu1 %vm139_vm2, %v119_v11 }
  0xe9   :  { %v292_v13 = vpop.f32.mrf.mxu0 }
 0x1a8   :  { %v177_v16 = vpop.f32.mrf.mxu1 }
 0x1a9   :  { %v178_v17 = vadd.f32 %v271_v15, %v177_v16 }
 0x1aa   :  { %v299_v18 = vpop.f32.mrf.mxu1 }
 0x1ab   :  { %v187_v19 = vpack.c.bf16 %v178_v17, %v178_v17 }
 0x1ac   :  { %v180_v20 = vpop.f32.mrf.mxu1 }
 0x1ad   :  { %306 = vmatmul.mubr.msk.bf16.vlgmr.msra.gmra.mxu0 %vm139_vm2, %v187_v19 }
 0x1ae   :  { %v300_v21 = vpop.f32.mrf.mxu1 }
 0x26d   :  { %v244_v23 = vpop.f32.mrf.mxu0 }
 0x26e   :  { %v245_v24 = vadd.f32 %v275_v22, %v244_v23 }
 0x26f   :  { %v307_v25 = vpop.f32.mrf.mxu0 }
 0x270   :  { %251 = vst.msk [vmem:[#allocation7] sm:$0xff] %vm250_vm3, %v245_v24 }
 0x271   :  { %v247_v26 = vpop.f32.mrf.mxu0 }
 0x272   :  { %372 = shalt.err (!%p369_p0)
}
 0x273   :  { %261 = dma.vmem_to_hbm [thread:$0]  %s259_s24, 128, %s471_s7, [#allocation4]   ;;  %v308_v27 = vpop.f32.mrf.mxu0 }
 0x274   :  { %385 = dma.done.wait [#allocation4], 128  }
 0x275   :  { %386 = vsyncadd [#allocation4], 4294967168 }
 0x276   :  { %265 = vsyncpa [#allocation3], 1 }
 0x277   :  { %266 = vsyncpa [#allocation6], 1 }
 0x278   :  { %267 = vsyncpa [#allocation4], 1 }

// kernel: tpu_custom_call.1
= control target key start
LH: loop header
LB: loop body
LE: loop exit
PB: predicated region body
PF: predicated region fallthrough
CT: control target
= control target key end

     0   :  { %12 = vsyncpa [#allocation3], 0  ;;  %s464_s0 = inlined_call_operand.vmem [shape: f32[8,16], index: 0, kind: input, shape index: {}]   ;;  %s465_s1 = inlined_call_operand.hbm [shape: bf16[16,32], index: 1, kind: input, shape index: {}]   ;;  %s466_s2 = inlined_call_operand.vmem [shape: f32[1,32], index: 2, kind: input, shape index: {}]   ;;  %s467_s3 = inlined_call_operand.vmem [shape: bf16[32,32], index: 3, kind: input, shape index: {}]   ;;  %s468_s4 = inlined_call_operand.hbm [shape: f32[1,32], index: 4, kind: input, shape index: {}]   ;;  %s469_s5 = inlined_call_operand.vmem [shape: bf16[32,8], index: 5, kind: input, shape index: {}]   ;;  %s470_s6 = inlined_call_operand.vmem [shape: f32[1,8], index: 6, kind: input, shape index: {}]   ;;  %s471_s7 = inlined_call_operand.hbm [shape: f32[8,8], index: 7, kind: output, shape index: {}]  }
   0x1   :  { %13 = vsyncpa [#allocation6], 0 }
   0x2   :  { %14 = vsyncpa [#allocation4], 0  ;;  %s387_s24 = smov [#allocation2]  }
   0x3   :  { %s22_s25 = sshll.u32 %s387_s24, 4  ;;  %s23_s25 = int_to_ptr.vmem [resolvable:$true] %s22_s25 }
   0x4   :  { %s329_s26 = scalar_lea.vmem %s23_s25, 128  ;;  %p334_p1 = scmp.lt.s32.totalorder %s23_s25, %s23_s25 }
   0x5   :  { %p330_p0 = scmp.ne.s32.totalorder %s23_s25, %s329_s26  ;;  %p335_p2 = scmp.lt.s32.totalorder %s329_s26, %s329_s26 }
   0x7   :  { %p336_p3 = por %p335_p2, %p334_p1 }
   0x9   :  { %p337_p4 = pnand %p336_p3, %p330_p0 }
   0xb   :  { %340 = shalt.err (!%p337_p4)
}
   0xc   :  { %s388_s27 = smov 64   ;;  %s389_s28 = smov 4  }
   0xd   :  { %28 = dma.hbm_to_vmem [thread:$0]  %s465_s1, 128, %s23_s25, [#allocation3], %s388_s27, %s388_s27, %s389_s28  }
   0xe   :  { %s390_s8 = smov [#allocation5]  }
   0xf   :  { %s39_s9 = sshll.u32 %s390_s8, 4  ;;  %s40_s9 = int_to_ptr.vmem [resolvable:$true] %s39_s9 }
  0x10   :  { %s349_s10 = scalar_lea.vmem %s40_s9, 16  ;;  %s353_s11 = scalar_lea.vmem %s40_s9, 32 }
  0x11   :  { %p350_p5 = scmp.ne.s32.totalorder %s40_s9, %s349_s10  ;;  %p354_p6 = scmp.lt.s32.totalorder %s40_s9, %s40_s9 }
  0x12   :  { %p355_p7 = scmp.lt.s32.totalorder %s353_s11, %s349_s10 }
  0x14   :  { %p356_p8 = por %p355_p7, %p354_p6 }
  0x16   :  { %p357_p9 = pnand %p356_p8, %p350_p5 }
  0x18   :  { %360 = shalt.err (!%p357_p9)
}
  0x19   :  { %42 = dma.hbm_to_vmem [thread:$0]  %s468_s4, 16, %s40_s9, [#allocation6]  }
  0x1a   :  { %381 = dma.done.wait [#allocation3], 128  }
  0x1b   :  { %382 = vsyncadd [#allocation3], 4294967168 }
  0x1c   :  { %383 = dma.done.wait [#allocation6], 16  }
  0x1d   :  { %384 = vsyncadd [#allocation6], 4294967280  ;;  %v391_v0 = vmov 0.0   ;;  %vm392_vm0 = vmmov 0   ;;  %v316_v1 = vld [vmem:[#allocation2] sm:$0xff]   ;;  %vm71_vm1 = vcmask 130048  }
  0x1e   :  { %287 = vmatprep.subr.bf16.mxu0 %v391_v0  ;;  %289 = vmatprep.mubr.msk.bf16.mxu0 %vm392_vm0, %v391_v0  ;;  %v54_v2 = vld [vmem:[%s464_s0] sm:$0xff]  ;;  %v317_v4 = vld [vmem:[%s467_s3 + $0x8] sm:$0xff]   ;;  %vm139_vm2 = vcmask 261120   ;;  %s393_s23 = smov [#allocation7]   ;;  %vm250_vm3 = vcmask 64512  }
  0x1f   :  { %293 = vmatprep.subr.bf16.mxu1 %v391_v0  ;;  %297 = vmatprep.mubr.msk.bf16.mxu1 %vm392_vm0, %v391_v0  ;;  %v57_v3 = vpack.c.bf16 %v54_v2, %v54_v2  ;;  %v318_v5 = vld [vmem:[%s467_s3] sm:$0xff]   ;;  %v319_v6 = vld [vmem:[%s469_s5 + $0x8] sm:$0xff]   ;;  %s258_s24 = sshll.u32 %s393_s23, 4  ;;  %s259_s24 = int_to_ptr.vmem [resolvable:$true] %s258_s24 }
  0x20   :  { %288 = vmatpush3.bf16.msra.mxu0 %v316_v1  ;;  %294 = vmatpush3.bf16.msra.mxu1 %v317_v4  ;;  %v268_v7 = vld [vmem:[%s466_s2] ss:$0 sm:$0xff]  ;;  %v271_v15 = vld [vmem:[#allocation5] ss:$0 sm:$0xff]  ;;  %p366_p11 = scmp.lt.s32.totalorder %s259_s24, %s259_s24 }
  0x21   :  { %301 = vmatprep.subr.bf16.mxu0 %v391_v0  ;;  %295 = vmatprep.subr.bf16.mxu1 %v391_v0  ;;  %v320_v14 = vld [vmem:[%s469_s5] sm:$0xff]   ;;  %s361_s5 = scalar_lea.vmem %s259_s24, 128 }
  0x22   :  { %v275_v22 = vld [vmem:[%s470_s6] ss:$0 sm:$0xff]  ;;  %p362_p10 = scmp.ne.s32.totalorder %s259_s24, %s361_s5  ;;  %p367_p12 = scmp.lt.s32.totalorder %s361_s5, %s361_s5 }
  0x23   :  { %290 = vmatmul.mubr.msk.bf16.vlgmr.msra.gmra.mxu0 %vm71_vm1, %v57_v3 }
  0x24   :  { %305 = vmatprep.mubr.msk.bf16.mxu0 %vm392_vm0, %v391_v0  ;;  %296 = vmatpush3.bf16.msra.mxu1 %v318_v5  ;;  %p368_p13 = por %p367_p12, %p366_p11 }
  0x25   :  { %302 = vmatpush3.bf16.msra.mxu0 %v319_v6 }
  0x26   :  { %303 = vmatprep.subr.bf16.mxu0 %v391_v0  ;;  %p369_p0 = pnand %p368_p13, %p362_p10 }
  0x29   :  { %304 = vmatpush3.bf16.msra.mxu0 %v320_v14 }
  0xe3   :  { %v109_v8 = vpop.f32.mrf.mxu0 }
  0xe4   :  { %v110_v9 = vadd.f32 %v268_v7, %v109_v8 }
  0xe5   :  { %v291_v10 = vpop.f32.mrf.mxu0 }
  0xe6   :  { %v119_v11 = vpack.c.bf16 %v110_v9, %v110_v9 }
  0xe7   :  { %v112_v12 = vpop.f32.mrf.mxu0 }
  0xe8   :  { %298 = vmatmul.mubr.msk.bf16.vlgmr.msra.gmra.mxu1 %vm139_vm2, %v119_v11 }
  0xe9   :  { %v292_v13 = vpop.f32.mrf.mxu0 }
 0x1a8   :  { %v177_v16 = vpop.f32.mrf.mxu1 }
 0x1a9   :  { %v178_v17 = vadd.f32 %v271_v15, %v177_v16 }
 0x1aa   :  { %v299_v18 = vpop.f32.mrf.mxu1 }
 0x1ab   :  { %v187_v19 = vpack.c.bf16 %v178_v17, %v178_v17 }
 0x1ac   :  { %v180_v20 = vpop.f32.mrf.mxu1 }
 0x1ad   :  { %306 = vmatmul.mubr.msk.bf16.vlgmr.msra.gmra.mxu0 %vm139_vm2, %v187_v19 }
 0x1ae   :  { %v300_v21 = vpop.f32.mrf.mxu1 }
 0x26d   :  { %v244_v23 = vpop.f32.mrf.mxu0 }
 0x26e   :  { %v245_v24 = vadd.f32 %v275_v22, %v244_v23 }
 0x26f   :  { %v307_v25 = vpop.f32.mrf.mxu0 }
 0x270   :  { %251 = vst.msk [vmem:[#allocation7] sm:$0xff] %vm250_vm3, %v245_v24 }
 0x271   :  { %v247_v26 = vpop.f32.mrf.mxu0 }
 0x272   :  { %372 = shalt.err (!%p369_p0)
}
 0x273   :  { %261 = dma.vmem_to_hbm [thread:$0]  %s259_s24, 128, %s471_s7, [#allocation4]   ;;  %v308_v27 = vpop.f32.mrf.mxu0 }
 0x274   :  { %385 = dma.done.wait [#allocation4], 128  }
 0x275   :  { %386 = vsyncadd [#allocation4], 4294967168 }
 0x276   :  { %265 = vsyncpa [#allocation3], 1 }
 0x277   :  { %266 = vsyncpa [#allocation6], 1 }
 0x278   :  { %267 = vsyncpa [#allocation4], 1 }

</bundles_post_ra>
